<compile_context>
chip_gen: v7x
topology: tpu7x:2x2x1
jax: 0.10.0
libtpu: 0.0.40
codegen_flags: <defaults>
</compile_context>

<pallas_src>
import functools

import jax
import jax.numpy as jnp
from jax.experimental import pallas as pl
from jax.experimental.pallas import tpu as pltpu


def _round_up(x, m):
    return ((x + m - 1) // m) * m


# -----------------------------------------------------------------------------
# Kernels: y = leaky_relu(x @ w_t + b).  Inputs are read from HBM in their
# original dtype and cast to the MXU compute dtype in vregs (no extra HBM pass).
# -----------------------------------------------------------------------------
def _linear_leaky_kernel(x_ref, w_ref, b_ref, o_ref, *, compute_dtype, slope):
    h = jnp.dot(x_ref[...].astype(compute_dtype),
                w_ref[...].astype(compute_dtype),
                preferred_element_type=jnp.float32)
    h = h + b_ref[...].astype(jnp.float32)          # (1, tn) broadcasts over rows
    o_ref[...] = jnp.maximum(h, slope * h).astype(o_ref.dtype)


def _linear_leaky_kernel_ktiled(x_ref, w_ref, b_ref, o_ref, acc_ref, *,
                                compute_dtype, slope):
    k = pl.program_id(2)

    @pl.when(k == 0)
    def _():
        acc_ref[...] = jnp.zeros_like(acc_ref)

    acc_ref[...] += jnp.dot(x_ref[...].astype(compute_dtype),
                            w_ref[...].astype(compute_dtype),
                            preferred_element_type=jnp.float32)

    @pl.when(k == pl.num_programs(2) - 1)
    def _():
        h = acc_ref[...] + b_ref[...].astype(jnp.float32)
        o_ref[...] = jnp.maximum(h, slope * h).astype(o_ref.dtype)


def embedding_forward(x, w_t, b, *, tile_m=512, tile_n=512, tile_k=2048,
                      compute_dtype=jnp.float32, out_dtype=None,
                      negative_slope=0.2):
    """LeakyReLU(x @ w_t + b, negative_slope).

    x:   [M, K]
    w_t: [K, N]   (PyTorch nn.Linear weight [N, K], pre-transposed)
    b:   [N]
    """
    M, K = x.shape
    K2, N = w_t.shape
    assert K == K2 and b.shape == (N,)
    out_dtype = x.dtype if out_dtype is None else out_dtype

    # NOTE: for tiny problems (grid of 1-2 steps) a fused XLA dot+bias+leaky_relu
    # is usually faster than any custom kernel launch; the Pallas path is kept
    # unconditional here so the kernel itself is exercised.

    # ---- VMEM budget: generation-aware (64 MiB on v7x, 128 MiB on v5e/v6e). ----
    try:
        vmem_cap = int(pltpu.get_tpu_info().vmem_capacity_bytes)
    except Exception:
        vmem_cap = 64 * 1024 * 1024
    budget = (vmem_cap * 3) // 4           # leave headroom for compiler scratch

    in_itemsize = 4                        # blocks stay f32; the cast is in-kernel
    out_itemsize = jnp.dtype(out_dtype).itemsize

    # ---- N tile: whole-N blocks when small (weight column block stays resident,
    #      masked stores are cheaper than padding + an extra output pass);
    #      otherwise lane-aligned 128-multiples with a cdiv grid.
    if N <= max(tile_n, 128):
        tile_n = N                          # == full dim -> legal even if not %128
    else:
        tile_n = max(128, (min(tile_n, N) // 128) * 128)
    grid_n = pl.cdiv(N, tile_n)

    # ---- M tile: whole-M when small, else an 8-aligned tile with a cdiv grid.
    if M <= tile_m:
        tile_m = M
    else:
        tile_m = _round_up(tile_m, 8)
    grid_m = pl.cdiv(M, tile_m)

    # v7x megacore: make sure a "parallel" axis has >= 2 steps when possible.
    if grid_m == 1 and grid_n == 1 and M >= 16:
        tile_m = _round_up(pl.cdiv(M, 2), 8)
        grid_m = pl.cdiv(M, tile_m)

    # ---- K: keep un-tiled (exact, single MXU pass per tile) unless the
    #      double-buffered f32 x / weight blocks would blow the VMEM budget.
    k_tiled = 2 * (tile_m * K + K * tile_n) * in_itemsize > (budget // 2)

    if not k_tiled:
        grid = (grid_m, grid_n)
        in_specs = [
            pl.BlockSpec((tile_m, K), lambda i, j: (i, 0)),   # x rows, full K
            pl.BlockSpec((K, tile_n), lambda i, j: (0, j)),   # weight column block
            pl.BlockSpec((1, tile_n), lambda i, j: (0, j)),   # bias column block
        ]
        out_specs = pl.BlockSpec((tile_m, tile_n), lambda i, j: (i, j))
        scratch_shapes = ()
        dim_sem = ("parallel", "parallel")
        kernel = functools.partial(_linear_leaky_kernel,
                                   compute_dtype=compute_dtype,
                                   slope=negative_slope)
        vmem_est = (2 * (tile_m * K + K * tile_n + tile_n) * in_itemsize
                    + 2 * tile_m * tile_n * out_itemsize)
    else:
        # Size tile_k so double-buffered x & w blocks fit ~half the budget, and
        # zero-pad K so the reduction never reads a ragged (garbage) edge.
        per_k = 2 * (tile_m + tile_n) * in_itemsize
        tile_k = max(128, min(_round_up(tile_k, 128),
                              ((budget // 2) // per_k // 128) * 128))
        k_pad = _round_up(K, tile_k)
        if k_pad != K:
            x = jnp.pad(x, ((0, 0), (0, k_pad - K)))
            w_t = jnp.pad(w_t, ((0, k_pad - K), (0, 0)))
        grid = (grid_m, grid_n, k_pad // tile_k)
        in_specs = [
            pl.BlockSpec((tile_m, tile_k), lambda i, j, k: (i, k)),
            pl.BlockSpec((tile_k, tile_n), lambda i, j, k: (k, j)),
            pl.BlockSpec((1, tile_n), lambda i, j, k: (0, j)),
        ]
        out_specs = pl.BlockSpec((tile_m, tile_n), lambda i, j, k: (i, j))
        scratch_shapes = [pltpu.VMEM((tile_m, tile_n), jnp.float32)]
        dim_sem = ("parallel", "parallel", "arbitrary")
        kernel = functools.partial(_linear_leaky_kernel_ktiled,
                                   compute_dtype=compute_dtype,
                                   slope=negative_slope)
        vmem_est = (2 * (tile_m * tile_k + tile_k * tile_n + tile_n) * in_itemsize
                    + 2 * tile_m * tile_n * out_itemsize
                    + tile_m * tile_n * 4)

    vmem_limit = int(min(max(int(1.5 * vmem_est), 16 * 1024 * 1024), budget))

    cost = pl.CostEstimate(
        flops=2 * M * K * N,
        transcendentals=0,
        bytes_accessed=(M * K + K * N) * in_itemsize + N * 4
        + M * N * out_itemsize,
    )

    return pl.pallas_call(
        kernel,
        out_shape=jax.ShapeDtypeStruct((M, N), out_dtype),
        grid_spec=pltpu.PrefetchScalarGridSpec(
            num_scalar_prefetch=0,
            grid=grid,
            in_specs=in_specs,
            out_specs=out_specs,
            scratch_shapes=scratch_shapes,
        ),
        compiler_params=pltpu.CompilerParams(
            dimension_semantics=dim_sem,
            vmem_limit_bytes=vmem_limit,
        ),
        cost_estimate=cost,
    )(x, w_t, b.reshape(1, N))


if __name__ == "__main__":
    # Shapes consistent with the module: batch=16, input_dim=32, hidden_dim=64.
    batch, input_dim, hidden_dim = 16, 32, 64

    key = jax.random.PRNGKey(0)
    kx, kw, kb = jax.random.split(key, 3)

    x = jax.random.normal(kx, (batch, input_dim), dtype=jnp.float32)
    # nn.Linear parameter shapes: weight [hidden_dim, input_dim], bias [hidden_dim]
    w = jax.random.normal(kw, (hidden_dim, input_dim), dtype=jnp.float32) * 0.1
    b = jax.random.normal(kb, (hidden_dim,), dtype=jnp.float32) * 0.1

    def ref_fwd(x_, w_, b_):
        h = x_ @ w_.T + b_
        return jnp.where(h > 0, h, 0.2 * h)

    ref = ref_fwd(x, w, b)

    # Default f32 path: bit-close to the PyTorch nn.Linear + LeakyReLU forward.
    out = jax.block_until_ready(embedding_forward(x, w.T, b))
    assert out.shape == (batch, hidden_dim)
    assert jnp.allclose(out, ref, atol=1e-5, rtol=1e-5)

    # Opt-in bf16 MXU path (f32 accumulation, cast happens inside the kernel).
    out_bf16 = jax.block_until_ready(
        embedding_forward(x, w.T, b, compute_dtype=jnp.bfloat16))
    assert out_bf16.shape == (batch, hidden_dim)
    assert jnp.allclose(out_bf16, ref, atol=5e-2, rtol=5e-2)

    print("KERNEL_OK")
</pallas_src>

<mosaic_0001>
module attributes {stable_mosaic.version = 11 : i64} {
  func.func @_linear_leaky_kernel(%arg0: i32, %arg1: i32, %arg2: memref<8x32xf32, #tpu.memory_space<vmem>>, %arg3: memref<32x64xf32, #tpu.memory_space<vmem>>, %arg4: memref<1x64xf32, #tpu.memory_space<vmem>>, %arg5: memref<8x64xf32, #tpu.memory_space<vmem>>) attributes {dimension_semantics = [#tpu.dimension_semantics<parallel>, #tpu.dimension_semantics<parallel>], iteration_bounds = array<i64: 2, 1>, scalar_prefetch = 0 : i64, scratch_operands = 0 : i64, tpu.core_type = #tpu.core_type<tc>, window_params = [{transform_indices = @transform_0, window_bounds = array<i64: 8, 32>}, {transform_indices = @transform_1, window_bounds = array<i64: 32, 64>}, {transform_indices = @transform_2, window_bounds = array<i64: 1, 64>}, {transform_indices = @transform_3, window_bounds = array<i64: 8, 64>}]} {
    %c0 = arith.constant 0 : index
    %c0_0 = arith.constant 0 : index
    %0 = vector.load %arg2[%c0, %c0_0] : memref<8x32xf32, #tpu.memory_space<vmem>>, vector<8x32xf32>
    %c0_1 = arith.constant 0 : index
    %c0_2 = arith.constant 0 : index
    %1 = vector.load %arg3[%c0_1, %c0_2] : memref<32x64xf32, #tpu.memory_space<vmem>>, vector<32x64xf32>
    %cst = arith.constant dense<0.000000e+00> : vector<8x64xf32>
    %2 = tpu.matmul %0, %1, %cst {dimension_numbers = #tpu.dot_dimension_numbers<[1], [0], [0], [1], [0, 0, 1, 1], [], []>} : vector<8x32xf32>, vector<32x64xf32>, vector<8x64xf32> -> vector<8x64xf32>
    %c0_3 = arith.constant 0 : index
    %c0_4 = arith.constant 0 : index
    %3 = vector.load %arg4[%c0_3, %c0_4] : memref<1x64xf32, #tpu.memory_space<vmem>>, vector<1x64xf32>
    %4 = vector.broadcast %3 : vector<1x64xf32> to vector<8x64xf32>
    %5 = arith.addf %2, %4 : vector<8x64xf32>
    %cst_5 = arith.constant 2.000000e-01 : f32
    %6 = vector.broadcast %cst_5 : f32 to vector<8x64xf32>
    %7 = arith.mulf %6, %5 : vector<8x64xf32>
    %8 = arith.maximumf %5, %7 : vector<8x64xf32>
    %c0_6 = arith.constant 0 : index
    %c0_7 = arith.constant 0 : index
    %9 = vector.load %arg5[%c0_6, %c0_7] : memref<8x64xf32, #tpu.memory_space<vmem>>, vector<8x64xf32>
    tpu.vector_store %arg5[%c0_6, %c0_7], %8 {strides = array<i32>} : memref<8x64xf32, #tpu.memory_space<vmem>>, vector<8x64xf32>,
    return
  }
  func.func @transform_0(%arg0: i32, %arg1: i32) -> (i32, i32) {
    %c0_i32 = arith.constant 0 : i32
    %c0_i32_0 = arith.constant 0 : i32
    return %arg0, %c0_i32 : i32, i32
  }
  func.func @transform_1(%arg0: i32, %arg1: i32) -> (i32, i32) {
    %c0_i32 = arith.constant 0 : i32
    %c0_i32_0 = arith.constant 0 : i32
    return %c0_i32, %arg1 : i32, i32
  }
  func.func @transform_2(%arg0: i32, %arg1: i32) -> (i32, i32) {
    %c0_i32 = arith.constant 0 : i32
    %c0_i32_0 = arith.constant 0 : i32
    return %c0_i32, %arg1 : i32, i32
  }
  func.func @transform_3(%arg0: i32, %arg1: i32) -> (i32, i32) {
    %c0_i32 = arith.constant 0 : i32
    return %arg0, %arg1 : i32, i32
  }
}

</mosaic_0001>

<bundles_post_ra>
// kernel: tpu_custom_call.1
= control target key start
LH: loop header
LB: loop body
LE: loop exit
PB: predicated region body
PF: predicated region fallthrough
CT: control target
= control target key end

     0   :  { %8 = vsyncpa [#allocation3], 0  ;;  %s953_s0 = inlined_call_operand.hbm [shape: f32[16,32], index: 0, kind: input, shape index: {}]   ;;  %s954_s1 = inlined_call_operand.hbm [shape: f32[32,64], index: 1, kind: input, shape index: {}]   ;;  %s955_s2 = inlined_call_operand.vmem [shape: f32[1,64], index: 2, kind: input, shape index: {}]   ;;  %s956_s3 = inlined_call_operand.hbm [shape: f32[16,64], index: 3, kind: output, shape index: {}]  }
   0x1   :  { %10 = vsyncpa [#allocation3 + $0x1], 0 }
   0x2   :  { %11 = vsyncpa [#allocation6], 0 }
   0x3   :  { %12 = vsyncpa [#allocation4], 0 }
   0x4   :  { %14 = vsyncpa [#allocation4 + $0x1], 0  ;;  %s736_s12 = smov 0   ;;  %s738_s13 = smov 0  }
   0x5   :  { %s740_s14 = smov 0   ;;  %s742_s15 = smov 0  }
   0x6   :  { %s744_s16 = smov 0   ;;  %s746_s17 = smov 0  }
   0x7 LB: > { %s444_s18 = sadd.s32 4294967295, %s706_s17   ;;  %s445_s19 = sadd.s32 4294967294, %s706_s17   ;;  %s706_s17 = sphi %s746_s17, %s20_s17   ;;  %s702_s16 = sphi %s744_s16, %s980_s16   ;;  %s698_s15 = sphi %s742_s15, %s979_s15   ;;  %s694_s14 = sphi %s740_s14, %s978_s14   ;;  %s690_s13 = sphi %s738_s13, %s977_s13   ;;  %s686_s12 = sphi %s736_s12, %s976_s12  }
   0x8   : > { %p52_p0 = scmp.ne.s32.totalorder %s690_s13, %s686_s12  ;;  %p770_p1 = scmp.eq.s32.totalorder %s444_s18, 0 }
   0x9   : > { %p774_p2 = scmp.eq.s32.totalorder %s444_s18, 1  ;;  %p136_p3 = scmp.eq.s32.totalorder %s445_s19, 1 }
   0xa   : > { %s961_s20 = scalar_select %p770_p1, 1, 0 }
   0xb   : > { %s962_s21 = scalar_select %p774_p2, 1, 0 }
   0xc   : > { %p780_p4 = por %p770_p1, %p52_p0  ;;  %p446_p5 = scmp.ge.s32.totalorder %s706_s17, 1 }
   0xd   : > { %p785_p6 = por %p136_p3, %p52_p0  ;;  %p143_p7 = scmp.lt.s32.totalorder %s706_s17, 3 }
   0xe   : > { %s963_s22 = scalar_select %p780_p4, 1, 0 }
   0xf   : > { %s964_s23 = scalar_select %p785_p6, 1, 0 }
  0x10   : > { %p790_p8 = pnand %p446_p5, %p143_p7  ;;  %s708_s25 = smov [#allocation5]  }
  0x11   : > { %s157_s26 = sshll.u32 %s708_s25, 4  ;;  %s32_s28 = sadd.s32 1, %s702_s16  ;;  %s158_s26 = int_to_ptr.vmem [resolvable:$true] %s157_s26 }
  0x12   : > { %s965_s24 = scalar_select %p790_p8, 1, 0 }
  0x13   : > { %p492_p9 = pneg %p790_p8  ;;  %s562_s4 = scalar_lea.hbm %s954_s1, 512 }
  0x14   : > { %p563_p12 = scmp.ne.s32.totalorder %s954_s1, %s562_s4  ;;  %p569_p5 = scmp.lt.u32.totalorder %s562_s4, %s954_s1 }
  0x15   : > { %p799_p11 = pnand %p492_p9, %p770_p1 }
  0x17   : > { %p564_p13 = pneg %p799_p11 }
  0x19   : > { %p565_p0 = pnand %p564_p13, %p563_p12 }
  0x1b   : > { %p566_p3 = pneg %p565_p0 }
  0x1d   : > { %p571_p7 = pnand %p569_p5, %p566_p3 }
  0x1f   : > { %574 = shalt.err (!%p571_p7)
}
  0x20   : > { %s575_s9 = scalar_lea.vmem %s158_s26, 512  ;;  %p583_p1 = scmp.lt.s32.totalorder %s158_s26, %s158_s26 }
  0x21   : > { %p576_p9 = scmp.ne.s32.totalorder %s158_s26, %s575_s9  ;;  %p584_p4 = scmp.lt.s32.totalorder %s575_s9, %s575_s9 }
  0x23   : > { %p578_p10 = pnand %p576_p9, %p564_p13  ;;  %p585_p8 = por %p584_p4, %p583_p1 }
  0x25   : > { %p579_p6 = pneg %p578_p10 }
  0x27   : > { %p586_p2 = pnand %p585_p8, %p579_p6 }
  0x29   : > { %589 = shalt.err (!%p586_p2)
}
  0x2a   : > { %s709_s10 = smov 128   ;;  %s710_s11 = smov 8  }
  0x2b   : > { %495 = dma.hbm_to_vmem [thread:$0]  (!%p799_p11), %s954_s1, 512, %s158_s26, [#allocation6], %s709_s10, %s709_s10, %s710_s11  }
  0x2c   : > { %p34_p1 = scmp.ge.s32.totalorder %s32_s28, 2  ;;  %s39_s25 = sadd.s32 1, %s694_s14 }
  0x2d   : > { %p46_p2 = scmp.ne.s32.totalorder %s694_s14, %s690_s13  ;;  %p47_p4 = scmp.eq.s32.totalorder %s706_s17, 0 }
  0x2e   : > { %s982_s28 = smov (%p34_p1, %s32_s28), 0  ;;  %p968_p8 = scmp.ne.s32.totalorder %s962_s21, 0 }
  0x2f   : > { %p826_p6 = por %p47_p4, %p46_p2  ;;  %s36_s27 = ssub.s32 %s702_s16, %s982_s28 }
  0x30   : > { %p832_p10 = por %p968_p8, %p46_p2  ;;  %p505_p12 = scmp.lt.s32.totalorder %s706_s17, 2 }
  0x31   : > { %p37_p11 = scmp.eq.s32.totalorder %s36_s27, 0  ;;  %s177_s26 = sand.u32 1, %s694_s14  }
  0x32   : > { %s450_s4 = sshll.u32 %s177_s26, 3  ;;  %s451_s6 = sshll.u32 %s702_s16, 7 }
  0x33   : > { %s841_s5 = scalar_select %p37_p11, %s694_s14, %s39_s25  }
  0x34   : > { %s847_s9 = scalar_lea.hbm %s953_s0, %s451_s6  ;;  %s181_s21 = scalar_lea.vmem [#allocation2], %s450_s4 }
  0x35   : > { %s188_s10 = sshll.u32 %s181_s21, 4  ;;  %p853_p13 = pnand %p505_p12, %p826_p6  ;;  %s849_s10 = int_to_ptr.vmem [resolvable:$true] %s188_s10 }
  0x36   : > { %s178_s18 = scalar_lea.sflag [#allocation3], %s177_s26  ;;  %s590_s19 = scalar_lea.hbm %s847_s9, 128 }
  0x37   : > { %p591_p0 = scmp.ne.s32.totalorder %s847_s9, %s590_s19  ;;  %p592_p3 = pneg %p853_p13 }
  0x38   : > { %s595_s4 = scalar_lea.hbm %s953_s0, 256  ;;  %p596_p9 = scmp.lt.u32.totalorder %s847_s9, %s953_s0 }
  0x39   : > { %p593_p5 = pnand %p592_p3, %p591_p0  ;;  %p597_p1 = scmp.lt.u32.totalorder %s595_s4, %s590_s19 }
  0x3a   : > { %p599_p4 = scmp.lt.u32.totalorder %s590_s19, %s847_s9 }
  0x3b   : > { %p594_p7 = pneg %p593_p5  ;;  %p598_p2 = por %p597_p1, %p596_p9 }
  0x3d   : > { %p600_p6 = por %p599_p4, %p598_p2 }
  0x3f   : > { %p601_p8 = pnand %p600_p6, %p594_p7 }
  0x41   : > { %604 = shalt.err (!%p601_p8)
}
  0x42   : > { %s605_s26 = scalar_lea.vmem %s849_s10, 128  ;;  %s711_s7 = smov [#allocation2]  }
  0x43   : > { %p606_p12 = scmp.ne.s32.totalorder %s849_s10, %s605_s26  ;;  %s610_s8 = sshll.u32 %s711_s7, 4  ;;  %s611_s8 = int_to_ptr.vmem [resolvable:$false] %s610_s8 }
  0x44   : > { %s612_s21 = scalar_lea.vmem %s611_s8, 256  ;;  %p613_p5 = scmp.lt.s32.totalorder %s849_s10, %s611_s8 }
  0x45   : > { %p608_p11 = pnand %p606_p12, %p592_p3  ;;  %p614_p9 = scmp.lt.s32.totalorder %s612_s21, %s605_s26 }
  0x47   : > { %p609_p0 = pneg %p608_p11  ;;  %p615_p1 = por %p614_p9, %p613_p5 }
  0x49   : > { %p616_p2 = pnand %p615_p1, %p609_p0 }
  0x4b   : > { %619 = shalt.err (!%p616_p2)
}
  0x4c   : > { %499 = dma.hbm_to_vmem [thread:$0]  (!%p853_p13), %s847_s9, 128, %s849_s10, %s178_s18  }
  0x4d   : > { %p971_p7 = scmp.ne.s32.totalorder %s965_s24, 0 }
  0x4e   : > { %s885_s19 = sand.u32 (!%p971_p7), 1, %s690_s13   ;;  %p972_p3 = scmp.ne.s32.totalorder (!%p971_p7), %s963_s22, 0 }
  0x4f   : > { %197 = sbr.rel (%p971_p7) target bundleno = 333 (0x14d), region = 32  ;;  %s453_s25 = sshll.u32 (!%p971_p7), %s885_s19, 3 }
  0x50   : > { %s200_s27 = scalar_lea.sflag (!%p971_p7), [#allocation3], %s885_s19  ;;  %s203_s4 = scalar_lea.vmem (!%p971_p7), [#allocation2], %s453_s25 }
  0x56   : > { %673 = dma.done.wait (%p972_p3), %s200_s27, 128  }
  0x57   : > { %675 = vsyncadd (%p972_p3), %s200_s27, 4294967168  ;;  %p973_p4 = scmp.ne.s32.totalorder %s961_s20, 0 }
  0x59   : > { %677 = dma.done.wait (%p973_p4), [#allocation6], 512  }
  0x5a   : > { %679 = vsyncadd (%p973_p4), [#allocation6], 4294966784  ;;  %v712_v0 = vmov 0.0|0.0   ;;  %vm713_vm0 = vmmov 0   ;;  %v714_v1 = vmov 0.0   ;;  %v237_v2 = vld [vmem:[#allocation5] sm:$0xff] }
  0x5b   : > { %478 = vmatprep.subr.bf16.mxu0 %v712_v0  ;;  %475 = vmatprep.mubr.msk.f32.mxu0 %vm713_vm0, %v714_v1  ;;  %v238_v3 = vld [vmem:[#allocation5 + $0x8] sm:$0xff]  ;;  %v239_v4 = vld [vmem:[#allocation5 + $0x10] sm:$0xff]  ;;  %v240_v6 = vld [vmem:[#allocation5 + $0x18] sm:$0xff]  ;;  %vm248_vm1 = vcmask 261120   ;;  %s459_s24 = sshll.u32 %s698_s15, 7  ;;  %s232_s9 = scalar_lea.vmem [#allocation7], %s453_s25 }
  0x5c   : > { %v479_v5 = vpack.c.bf16 %v238_v3, %v237_v2  ;;  %v482_v7 = vpack.c.bf16 %v240_v6, %v239_v4  ;;  %v236_v8 = vld [vmem:[%s203_s4] sm:$0xff]  ;;  %s341_s10 = sshll.u32 %s232_s9, 4  ;;  %vm324_vm2 = vcmask 523264   ;;  %s904_s29 = scalar_lea.hbm %s956_s3, %s459_s24  ;;  %s906_s10 = int_to_ptr.vmem [resolvable:$true] %s341_s10 }
  0x5d   : > { %v456_v9 = vld [vmem:[%s955_s2] ss:$0 sm:$0xff]  ;;  %s327_s6 = scalar_lea.sflag [#allocation4], %s885_s19  ;;  %s620_s26 = scalar_lea.vmem %s906_s10, 128 }
  0x5e   : > { %480 = vmatpush3.bf16.msra.mxu0 %v479_v5  ;;  %p621_p13 = scmp.ne.s32.totalorder %s906_s10, %s620_s26  ;;  %s715_s15 = smov [#allocation7]  }
  0x5f   : > { %481 = vmatprep.subr.bf16.mxu0 %v712_v0  ;;  %s624_s7 = sshll.u32 %s715_s15, 4  ;;  %s625_s7 = int_to_ptr.vmem [resolvable:$false] %s624_s7 }
  0x60   : > { %p622_p6 = pnand %p621_p13, %p832_p10  ;;  %s626_s8 = scalar_lea.vmem %s625_s7, 256 }
  0x61   : > { %p627_p12 = scmp.lt.s32.totalorder %s906_s10, %s625_s7  ;;  %p628_p11 = scmp.lt.s32.totalorder %s626_s8, %s620_s26 }
  0x62   : > { %483 = vmatpush3.bf16.msra.mxu0 %v482_v7  ;;  %p623_p8 = pneg %p622_p6 }
  0x63   : > { %p629_p0 = por %p628_p11, %p627_p12 }
  0x65   : > { %476 = vmatmul.mubr.msk.f32.vlgmr.msra.gmra.mrb[0].mxu0 %vm248_vm1, %v236_v8  ;;  %p630_p5 = pnand %p629_p0, %p623_p8 }
 0x138   : > { %v318_v10 = vpop.f32.mrb[0].mxu0 }
 0x139   : > { %v319_v11 = vadd.f32 %v456_v9, %v318_v10  ;;  %v477_v12 = vpop.f32.mrb[1].mxu0 }
 0x13b   : > { %v322_v13 = vmul.f32 0.2, %v319_v11 }
 0x13d   : > { %v323_v14 = vmax.f32 %v319_v11, %v322_v13 }
 0x13f   : > { %325 = vst.msk [vmem:[%s232_s9] sm:$0xff] %vm324_vm2, %v323_v14 }
 0x140   : > { %633 = shalt.err (!%p630_p5)
}
 0x141   : > { %s634_s21 = scalar_lea.hbm %s904_s29, 128  ;;  %s638_s27 = scalar_lea.hbm %s956_s3, 256 }
 0x142   : > { %p635_p9 = scmp.ne.s32.totalorder %s904_s29, %s634_s21  ;;  %p639_p7 = scmp.lt.u32.totalorder %s904_s29, %s956_s3 }
 0x143   : > { %p640_p3 = scmp.lt.u32.totalorder %s638_s27, %s634_s21  ;;  %p642_p13 = scmp.lt.u32.totalorder %s634_s21, %s904_s29 }
 0x144   : > { %p636_p1 = pnand %p635_p9, %p832_p10 }
 0x145   : > { %p641_p4 = por %p640_p3, %p639_p7 }
 0x146   : > { %p637_p2 = pneg %p636_p1 }
 0x147   : > { %p643_p6 = por %p642_p13, %p641_p4 }
 0x149   : > { %p644_p8 = pnand %p643_p6, %p637_p2 }
 0x14b   : > { %647 = shalt.err (!%p644_p8)
}
 0x14c   : > { %490 = dma.vmem_to_hbm [thread:$0]  (%p832_p10), %s906_s10, 128, %s904_s29, %s327_s6  }
 0x14d PF: > { %s353_s22 = sand.u32 1, %s686_s12   ;;  %p974_p12 = scmp.ne.s32.totalorder %s964_s23, 0 }
 0x14e   : > { %p975_p11 = scmp.ge.s32.totalorder %s706_s17, 2  ;;  %s354_s24 = scalar_lea.sflag [#allocation4], %s353_s22 }
 0x150   : > { %p501_p0 = pnand %p975_p11, %p974_p12 }
 0x152   : > { %681 = dma.done.wait (!%p501_p0), %s354_s24, 128  }
 0x153   : > { %683 = vsyncadd (!%p501_p0), %s354_s24, 4294967168  ;;  %s20_s17 = sadd.s32 1, %s706_s17   ;;  %s976_s12 = smov %s690_s13 }
 0x154   : > { %p17_p5 = scmp.ge.s32.totalorder %s20_s17, 4   ;;  %s977_s13 = smov %s694_s14 }
 0x155   : > { %s978_s14 = smov %s841_s5  ;;  %s979_s15 = smov %s702_s16 }
 0x156   : > { %s980_s16 = smov %s982_s28  ;;  %19 = sbr.rel (!%p17_p5) target bundleno = 7 (0x7), region = 85 }
 0x15d   :  { %359 = vsyncpa [#allocation3], 1 }
 0x15e   :  { %361 = vsyncpa [#allocation3 + $0x1], 1 }
 0x15f   :  { %362 = vsyncpa [#allocation6], 1 }
 0x160   :  { %363 = vsyncpa [#allocation4], 1 }
 0x161   :  { %365 = vsyncpa [#allocation4 + $0x1], 1 }

</bundles_post_ra>
